<compile_context>
chip_gen: v7x
topology: tpu7x:2x2x1
jax: 0.10.0
libtpu: 0.0.40
codegen_flags: <defaults>
</compile_context>

<pallas_src>
import jax
import jax.numpy as jnp
from jax.experimental import pallas as pl
from jax.experimental.pallas import tpu as pltpu

LANES = 128                 # vreg lane width
SUBLANES = 8                # vreg sublane count (f32)
TARGET_BLOCK_BYTES = 2 << 20  # ~2 MiB per input block per buffer


def _detect_num_tensorcores() -> int:
    """2 on megacore chips (v4 / v5p / v7x), else 1. Conservative fallback = 1."""
    try:
        dev = jax.devices()[0]
        if dev.platform != "tpu":
            return 1
        kind = str(getattr(dev, "device_kind", "")).lower()
        if any(tag in kind for tag in ("v4", "v5p", "v7")):
            return 2
    except Exception:
        pass
    return 1


def mse_loss(y_ground: jax.Array, y_pred: jax.Array) -> jax.Array:
    assert y_ground.shape == y_pred.shape, (
        f"SHAPE MISMATCH - y_ground.shape={y_ground.shape}, "
        f"y_pred.shape={y_pred.shape}"
    )
    n = y_ground.size
    itemsize = jnp.dtype(y_ground.dtype).itemsize

    g = y_ground.reshape(-1)
    p = y_pred.reshape(-1)

    # Dtype-aware sublane alignment: f32 -> 8 rows, bf16 -> 16, int8/fp8 -> 32.
    packing = max(1, 4 // itemsize)
    sublane_align = SUBLANES * packing

    # Minimal tail pad only (zero padding contributes (0-0)^2 = 0). No dtype cast here —
    # the f32 upcast happens in-kernel, so the HBM stream stays in the native dtype.
    pad = (-n) % (LANES * sublane_align)
    if pad:
        g = jnp.pad(g, (0, pad))
        p = jnp.pad(p, (0, pad))
    rows = (n + pad) // LANES              # multiple of sublane_align
    g2 = g.reshape(rows, LANES)
    p2 = p.reshape(rows, LANES)

    # ~2 MiB input blocks, rounded to the packing-aligned row multiple.
    max_block_rows = max(
        sublane_align,
        (TARGET_BLOCK_BYTES // (LANES * itemsize)) // sublane_align * sublane_align,
    )
    block_rows = min(max_block_rows, rows)
    total_blocks = -(-rows // block_rows)

    num_cores = min(_detect_num_tensorcores(), total_blocks)
    blocks_per_core = -(-total_blocks // num_cores)   # grid extent along the block axis
    base = total_blocks // num_cores
    rem = total_blocks % num_cores                    # first `rem` cores get one extra block
    uneven = rem != 0

    tail_rows = rows - (total_blocks - 1) * block_rows
    ragged = tail_rows != block_rows                  # last logical block is partial

    def in_index_map(c, i):
        start = c * base + jnp.minimum(c, rem)
        count = jnp.where(c < rem, base + 1, base)
        # Clamp surplus steps to this core's own last block: the block index then equals
        # the previous step's index, so Pallas skips the redundant HBM DMA.
        blk = start + jnp.minimum(i, count - 1)
        return (jnp.clip(blk, 0, total_blocks - 1), 0)

    def kernel(g_ref, p_ref, o_ref, acc_ref):
        c = pl.program_id(0)
        i = pl.program_id(1)

        @pl.when(i == 0)
        def _init():
            acc_ref[...] = jnp.zeros_like(acc_ref)

        def accumulate(mask_tail):
            d = g_ref[...].astype(jnp.float32) - p_ref[...].astype(jnp.float32)
            dd = d * d
            if mask_tail:
                # Mask rows beyond the valid data (OOB region of a partial block is
                # undefined; where-select drops it even if it squares to inf/nan).
                rid = jax.lax.broadcasted_iota(jnp.int32, (block_rows, LANES), 0)
                dd = jnp.where(rid < tail_rows, dd, jnp.float32(0.0))
            # Free leading-axis reshape into (8,128) vreg tiles + tree add into the
            # one-vreg accumulator (no 1 MiB accumulator RMW per step).
            # TODO(synk): for extremely large n, consider a two-level f32 sum to bound
            # rounding error of the single-vreg accumulator.
            acc_ref[...] += dd.reshape(block_rows // SUBLANES, SUBLANES, LANES).sum(axis=0)

        if uneven or ragged:
            start = c * base + jnp.minimum(c, rem)
            count = jnp.where(c < rem, base + 1, base)
            blk = start + i
            is_real = i < count
            if ragged:
                is_tail = blk == (total_blocks - 1)

                @pl.when(jnp.logical_and(is_real, jnp.logical_not(is_tail)))
                def _full():
                    accumulate(mask_tail=False)

                @pl.when(jnp.logical_and(is_real, is_tail))
                def _tail():
                    accumulate(mask_tail=True)
            else:
                @pl.when(is_real)
                def _full():
                    accumulate(mask_tail=False)
        else:
            # Fast path: every step is a full, real block — no iota, no mask, no gate.
            accumulate(mask_tail=False)

        @pl.when(i == pl.num_programs(1) - 1)
        def _finalize():
            # Single cross-lane reduction of one vreg, once per core.
            o_ref[...] = jnp.sum(acc_ref[...]).reshape(1, 1, 1)

    # VMEM budget: 2 inputs x 2 buffers x block + f32 intermediates + headroom.
    block_bytes = block_rows * LANES * itemsize
    vmem_budget = 4 * block_bytes + 3 * block_rows * LANES * 4 + (4 << 20)
    vmem_limit_bytes = int(min(max(vmem_budget, 32 << 20), 48 << 20))

    in_spec = pl.BlockSpec((block_rows, LANES), in_index_map)

    partials = pl.pallas_call(
        kernel,
        out_shape=jax.ShapeDtypeStruct((num_cores, 1, 1), jnp.float32),
        grid_spec=pltpu.PrefetchScalarGridSpec(
            num_scalar_prefetch=0,
            grid=(num_cores, blocks_per_core),
            in_specs=[in_spec, in_spec],
            out_specs=pl.BlockSpec((1, 1, 1), lambda c, i: (c, 0, 0)),
            scratch_shapes=[pltpu.VMEM((SUBLANES, LANES), jnp.float32)],
        ),
        compiler_params=pltpu.CompilerParams(
            # TODO(synk): if xprof shows only one TC busy on v7x, switch the leading
            # axis to pltpu.CORE_PARALLEL (or pl.core_map over a tensorcore mesh).
            dimension_semantics=("parallel", "arbitrary"),
            vmem_limit_bytes=vmem_limit_bytes,
        ),
        cost_estimate=pl.CostEstimate(
            flops=3 * n,
            transcendentals=0,
            bytes_accessed=2 * (n + pad) * itemsize + num_cores * 4,
        ),
    )(g2, p2)

    mse = jnp.sum(partials) / jnp.float32(n)   # divide by the true element count
    return mse.astype(y_ground.dtype)


if __name__ == "__main__":
    key = jax.random.PRNGKey(0)
    kg, kp = jax.random.split(key)
    # Small NCHW-style shapes consistent with a typical regression/segmentation use.
    y_ground = jax.random.normal(kg, (2, 4, 16, 16), dtype=jnp.float32)
    y_pred = jax.random.normal(kp, (2, 4, 16, 16), dtype=jnp.float32)

    out = mse_loss(y_ground, y_pred)
    out = jax.block_until_ready(out)

    # Reference check in plain JAX (PyTorch MSELoss reduction='mean').
    ref = jnp.mean(jnp.square(y_ground - y_pred))
    assert jnp.allclose(out, ref, rtol=1e-5, atol=1e-6), (out, ref)

    print("KERNEL_OK")
</pallas_src>

<mosaic_0001>
module attributes {stable_mosaic.version = 11 : i64} {
  func.func @kernel(%arg0: i32, %arg1: i32, %arg2: memref<16x128xf32, #tpu.memory_space<vmem>>, %arg3: memref<16x128xf32, #tpu.memory_space<vmem>>, %arg4: memref<1x1x1xf32, #tpu.memory_space<vmem>>, %arg5: memref<8x128xf32, #tpu.memory_space<vmem>>) attributes {dimension_semantics = [#tpu.dimension_semantics<parallel>, #tpu.dimension_semantics<arbitrary>], iteration_bounds = array<i64: 1, 1>, scalar_prefetch = 0 : i64, scratch_operands = 1 : i64, tpu.core_type = #tpu.core_type<tc>, window_params = [{transform_indices = @transform_0, window_bounds = array<i64: 16, 128>}, {transform_indices = @transform_1, window_bounds = array<i64: 16, 128>}, {transform_indices = @transform_2, window_bounds = array<i64: 1, 1, 1>}]} {
    %c0_i32 = arith.constant 0 : i32
    %0 = arith.cmpi eq, %arg1, %c0_i32 : i32
    %1 = arith.extui %0 : i1 to i32
    %c0_i32_0 = arith.constant 0 : i32
    %2 = arith.cmpi ne, %1, %c0_i32_0 : i32
    scf.if %2 {
      %cst_10 = arith.constant 0.000000e+00 : f32
      %15 = vector.broadcast %cst_10 : f32 to vector<8x128xf32>
      %c0_11 = arith.constant 0 : index
      %c0_12 = arith.constant 0 : index
      %16 = vector.load %arg5[%c0_11, %c0_12] : memref<8x128xf32, #tpu.memory_space<vmem>>, vector<8x128xf32>
      tpu.vector_store %arg5[%c0_11, %c0_12], %15 {strides = array<i32>} : memref<8x128xf32, #tpu.memory_space<vmem>>, vector<8x128xf32>,
    } else {
    }
    %c0 = arith.constant 0 : index
    %c0_1 = arith.constant 0 : index
    %3 = vector.load %arg2[%c0, %c0_1] : memref<16x128xf32, #tpu.memory_space<vmem>>, vector<16x128xf32>
    %c0_2 = arith.constant 0 : index
    %c0_3 = arith.constant 0 : index
    %4 = vector.load %arg3[%c0_2, %c0_3] : memref<16x128xf32, #tpu.memory_space<vmem>>, vector<16x128xf32>
    %5 = arith.subf %3, %4 : vector<16x128xf32>
    %6 = arith.mulf %5, %5 : vector<16x128xf32>
    %c0_4 = arith.constant 0 : index
    %c0_5 = arith.constant 0 : index
    %7 = vector.load %arg5[%c0_4, %c0_5] : memref<8x128xf32, #tpu.memory_space<vmem>>, vector<8x128xf32>
    %8 = vector.shape_cast %6 : vector<16x128xf32> to vector<2x8x128xf32>
    %cst = arith.constant dense<0.000000e+00> : vector<8x128xf32>
    %9 = vector.multi_reduction <add>, %8, %cst [0] : vector<2x8x128xf32> to vector<8x128xf32>
    %10 = arith.addf %7, %9 : vector<8x128xf32>
    %c0_6 = arith.constant 0 : index
    %c0_7 = arith.constant 0 : index
    %11 = vector.load %arg5[%c0_6, %c0_7] : memref<8x128xf32, #tpu.memory_space<vmem>>, vector<8x128xf32>
    tpu.vector_store %arg5[%c0_6, %c0_7], %10 {strides = array<i32>} : memref<8x128xf32, #tpu.memory_space<vmem>>, vector<8x128xf32>,
    %c0_i32_8 = arith.constant 0 : i32
    %12 = arith.cmpi eq, %arg1, %c0_i32_8 : i32
    %13 = arith.extui %12 : i1 to i32
    %c0_i32_9 = arith.constant 0 : i32
    %14 = arith.cmpi ne, %13, %c0_i32_9 : i32
    scf.if %14 {
      %c0_10 = arith.constant 0 : index
      %c0_11 = arith.constant 0 : index
      %15 = vector.load %arg5[%c0_10, %c0_11] : memref<8x128xf32, #tpu.memory_space<vmem>>, vector<8x128xf32>
      %16 = vector.shape_cast %15 : vector<8x128xf32> to vector<1x8x128xf32>
      %cst_12 = arith.constant dense<0.000000e+00> : vector<1xf32>
      %17 = vector.multi_reduction <add>, %16, %cst_12 [1, 2] : vector<1x8x128xf32> to vector<1xf32>
      %18 = vector.shape_cast %17 : vector<1xf32> to vector<1x1x1xf32>
      %19 = vector.extract %18[0, 0, 0] : f32 from vector<1x1x1xf32>
      %20 = vector.broadcast %19 : f32 to vector<1x1x1xf32>
      %c0_13 = arith.constant 0 : index
      %c0_14 = arith.constant 0 : index
      %c0_15 = arith.constant 0 : index
      %21 = vector.load %arg4[%c0_13, %c0_14, %c0_15] : memref<1x1x1xf32, #tpu.memory_space<vmem>>, vector<1x1x1xf32>
      tpu.vector_store %arg4[%c0_13, %c0_14, %c0_15], %20 {strides = array<i32>} : memref<1x1x1xf32, #tpu.memory_space<vmem>>, vector<1x1x1xf32>,
    } else {
    }
    return
  }
  func.func @transform_0(%arg0: i32, %arg1: i32) -> (i32, i32) {
    %c1_i32 = arith.constant 1 : i32
    %0 = arith.muli %arg0, %c1_i32 : i32
    %c0_i32 = arith.constant 0 : i32
    %1 = arith.minsi %arg0, %c0_i32 : i32
    %2 = arith.addi %0, %1 : i32
    %c0_i32_0 = arith.constant 0 : i32
    %3 = arith.cmpi slt, %arg0, %c0_i32_0 : i32
    %c2_i32 = arith.constant 2 : i32
    %c1_i32_1 = arith.constant 1 : i32
    %4 = arith.select %3, %c2_i32, %c1_i32_1 : i32
    %c1_i32_2 = arith.constant 1 : i32
    %5 = arith.subi %4, %c1_i32_2 : i32
    %6 = arith.minsi %arg1, %5 : i32
    %7 = arith.addi %2, %6 : i32
    %c0_i32_3 = arith.constant 0 : i32
    %c0_i32_4 = arith.constant 0 : i32
    %8 = arith.maxsi %c0_i32_3, %7 : i32
    %9 = arith.minsi %c0_i32_4, %8 : i32
    %c0_i32_5 = arith.constant 0 : i32
    %c0_i32_6 = arith.constant 0 : i32
    return %9, %c0_i32_5 : i32, i32
  }
  func.func @transform_1(%arg0: i32, %arg1: i32) -> (i32, i32) {
    %c1_i32 = arith.constant 1 : i32
    %0 = arith.muli %arg0, %c1_i32 : i32
    %c0_i32 = arith.constant 0 : i32
    %1 = arith.minsi %arg0, %c0_i32 : i32
    %2 = arith.addi %0, %1 : i32
    %c0_i32_0 = arith.constant 0 : i32
    %3 = arith.cmpi slt, %arg0, %c0_i32_0 : i32
    %c2_i32 = arith.constant 2 : i32
    %c1_i32_1 = arith.constant 1 : i32
    %4 = arith.select %3, %c2_i32, %c1_i32_1 : i32
    %c1_i32_2 = arith.constant 1 : i32
    %5 = arith.subi %4, %c1_i32_2 : i32
    %6 = arith.minsi %arg1, %5 : i32
    %7 = arith.addi %2, %6 : i32
    %c0_i32_3 = arith.constant 0 : i32
    %c0_i32_4 = arith.constant 0 : i32
    %8 = arith.maxsi %c0_i32_3, %7 : i32
    %9 = arith.minsi %c0_i32_4, %8 : i32
    %c0_i32_5 = arith.constant 0 : i32
    %c0_i32_6 = arith.constant 0 : i32
    return %9, %c0_i32_5 : i32, i32
  }
  func.func @transform_2(%arg0: i32, %arg1: i32) -> (i32, i32, i32) {
    %c0_i32 = arith.constant 0 : i32
    %c0_i32_0 = arith.constant 0 : i32
    %c0_i32_1 = arith.constant 0 : i32
    return %arg0, %c0_i32, %c0_i32_0 : i32, i32, i32
  }
}

</mosaic_0001>

<bundles_post_ra>
// kernel: tpu_custom_call.1
= control target key start
LH: loop header
LB: loop body
LE: loop exit
PB: predicated region body
PF: predicated region fallthrough
CT: control target
= control target key end

     0   :  { %7 = vsyncpa [#allocation4], 0  ;;  %s280_s0 = inlined_call_operand.hbm [shape: f32[16,128], index: 0, kind: input, shape index: {}]   ;;  %s281_s1 = inlined_call_operand.hbm [shape: f32[16,128], index: 1, kind: input, shape index: {}]   ;;  %s282_s2 = inlined_call_operand.hbm [shape: f32[1,1,1], index: 2, kind: output, shape index: {}]  }
   0x1   :  { %8 = vsyncpa [#allocation7], 0 }
   0x2   :  { %9 = vsyncpa [#allocation5], 0  ;;  %s224_s9 = smov [#allocation3]   ;;  %s152_s13 = scalar_lea.hbm %s280_s0, 256 }
   0x3   :  { %s29_s10 = sshll.u32 %s224_s9, 4  ;;  %p153_p0 = scmp.ne.s32.totalorder %s280_s0, %s152_s13  ;;  %s30_s10 = int_to_ptr.vmem [resolvable:$true] %s29_s10 }
   0x4   :  { %p156_p1 = scmp.lt.u32.totalorder %s152_s13, %s280_s0 }
   0x6   :  { %p158_p2 = pnand %p156_p1, %p153_p0 }
   0x8   :  { %161 = shalt.err (!%p158_p2)
}
   0x9   :  { %s162_s18 = scalar_lea.vmem %s30_s10, 256  ;;  %p167_p4 = scmp.lt.s32.totalorder %s30_s10, %s30_s10 }
   0xa   :  { %p163_p3 = scmp.ne.s32.totalorder %s30_s10, %s162_s18  ;;  %p168_p5 = scmp.lt.s32.totalorder %s162_s18, %s162_s18 }
   0xc   :  { %p169_p6 = por %p168_p5, %p167_p4 }
   0xe   :  { %p170_p7 = pnand %p169_p6, %p163_p3 }
  0x10   :  { %173 = shalt.err (!%p170_p7)
}
  0x11   :  { %s225_s19 = smov 128   ;;  %s226_s20 = smov 8  }
  0x12   :  { %35 = dma.hbm_to_vmem [thread:$0]  %s280_s0, 256, %s30_s10, [#allocation4], %s225_s19, %s225_s19, %s226_s20  }
  0x13   :  { %s227_s23 = smov [#allocation6]   ;;  %s174_s27 = scalar_lea.hbm %s281_s1, 256 }
  0x14   :  { %s55_s24 = sshll.u32 %s227_s23, 4  ;;  %p175_p8 = scmp.ne.s32.totalorder %s281_s1, %s174_s27  ;;  %s56_s24 = int_to_ptr.vmem [resolvable:$true] %s55_s24 }
  0x15   :  { %p178_p9 = scmp.lt.u32.totalorder %s174_s27, %s281_s1 }
  0x17   :  { %p180_p10 = pnand %p178_p9, %p175_p8 }
  0x19   :  { %183 = shalt.err (!%p180_p10)
}
  0x1a   :  { %s184_s4 = scalar_lea.vmem %s56_s24, 256  ;;  %p189_p12 = scmp.lt.s32.totalorder %s56_s24, %s56_s24 }
  0x1b   :  { %p185_p11 = scmp.ne.s32.totalorder %s56_s24, %s184_s4  ;;  %p190_p13 = scmp.lt.s32.totalorder %s184_s4, %s184_s4 }
  0x1d   :  { %p191_p0 = por %p190_p13, %p189_p12 }
  0x1f   :  { %p192_p1 = pnand %p191_p0, %p185_p11 }
  0x21   :  { %195 = shalt.err (!%p192_p1)
}
  0x22   :  { %61 = dma.hbm_to_vmem [thread:$0]  %s281_s1, 256, %s56_s24, [#allocation7], %s225_s19, %s225_s19, %s226_s20  }
  0x23   :  { %218 = dma.done.wait [#allocation4], 256  }
  0x24   :  { %219 = vsyncadd [#allocation4], 4294967040 }
  0x25   :  { %220 = dma.done.wait [#allocation7], 256  }
  0x26   :  { %221 = vsyncadd [#allocation7], 4294967040  ;;  %v97_v0 = vld [vmem:[#allocation3] sm:$0xff]  ;;  %v98_v1 = vld [vmem:[#allocation3 + $0x8] sm:$0xff]  ;;  %s228_s1 = smov [#allocation8]   ;;  %vm123_vm0 = vcmask 0  }
  0x27   :  { %v99_v2 = vld [vmem:[#allocation6] sm:$0xff]  ;;  %v100_v3 = vld [vmem:[#allocation6 + $0x8] sm:$0xff]  ;;  %s131_s6 = sshll.u32 %s228_s1, 4  ;;  %s132_s6 = int_to_ptr.vmem [resolvable:$true] %s131_s6 }
  0x28   :  { %v101_v4 = vsub.f32 %v97_v0, %v99_v2  ;;  %v102_v5 = vsub.f32 %v98_v1, %v100_v3  ;;  %s196_s8 = scalar_lea.vmem %s132_s6, 16  ;;  %s200_s9 = scalar_lea.vmem %s132_s6, 32 }
  0x29   :  { %p197_p2 = scmp.ne.s32.totalorder %s132_s6, %s196_s8  ;;  %p201_p3 = scmp.lt.s32.totalorder %s132_s6, %s132_s6 }
  0x2a   :  { %v103_v6 = vmul.f32 %v101_v4, %v101_v4  ;;  %v104_v7 = vmul.f32 %v102_v5, %v102_v5  ;;  %p202_p4 = scmp.lt.s32.totalorder %s200_s9, %s196_s8 }
  0x2c   :  { %v106_v8 = vadd.f32 %v104_v7, %v103_v6  ;;  %p203_p5 = por %p202_p4, %p201_p3 }
  0x2e   :  { %113 = vadd.xlane.f32.xlu0 %v106_v8  ;;  %p204_p6 = pnand %p203_p5, %p197_p2 }
  0xbb   :  { %v114_v9 = vpop.xlane.xlu0 %113 }
  0xbc   :  { %v115_v10 = vrot.slane %v114_v9, 4 }
  0xbe   :  { %v116_v11 = vadd.f32 %v115_v10, %v114_v9 }
  0xc0   :  { %v117_v12 = vrot.slane %v116_v11, 2 }
  0xc2   :  { %v118_v13 = vadd.f32 %v117_v12, %v116_v11 }
  0xc4   :  { %v119_v14 = vrot.slane %v118_v13, 1 }
  0xc6   :  { %v120_v15 = vadd.f32 %v119_v14, %v118_v13 }
  0xc8   :  { %145 = vpush %v120_v15 }
  0xf9   :  { %s146_s7 = spop %145 }
  0xfa   :  { %v122_v16 = vstv %s146_s7 }
  0xfb   :  { %124 = vst.msk [vmem:[#allocation8] sm:$0x1] %vm123_vm0, %v122_v16 }
  0xfc   :  { %207 = shalt.err (!%p204_p6)
}
  0xfd   :  { %s208_s12 = scalar_lea.hbm %s282_s2, 16 }
  0xfe   :  { %p209_p7 = scmp.ne.s32.totalorder %s282_s2, %s208_s12  ;;  %p212_p8 = scmp.lt.u32.totalorder %s208_s12, %s282_s2 }
 0x100   :  { %p214_p9 = pnand %p212_p8, %p209_p7 }
 0x102   :  { %217 = shalt.err (!%p214_p9)
}
 0x103   :  { %134 = dma.vmem_to_hbm [thread:$0]  %s132_s6, 16, %s282_s2, [#allocation5]  }
 0x104   :  { %222 = dma.done.wait [#allocation5], 16  }
 0x105   :  { %223 = vsyncadd [#allocation5], 4294967280 }
 0x106   :  { %138 = vsyncpa [#allocation4], 1 }
 0x107   :  { %139 = vsyncpa [#allocation7], 1 }
 0x108   :  { %140 = vsyncpa [#allocation5], 1 }

</bundles_post_ra>
